<compile_context>
chip_gen: v7x
topology: tpu7x:2x2x1
jax: 0.10.0
libtpu: 0.0.40
codegen_flags: <defaults>
</compile_context>

<pallas_src>
import jax
import jax.numpy as jnp
from jax.experimental import pallas as pl
from jax.experimental.pallas import tpu as pltpu


_LANE = 128          # TPU lane width (internal padding of hidden / w2 lanes).
_MAX_TILE_N = 2048   # Row-tile cap; multiple of 16 (bf16 sublane packing).


def _round_up(x, m):
    return (x + m - 1) // m * m


def _mlp_kernel(x_ref, w1_ref, b1_ref, w2_ref, b2_ref, o_ref):
    # x_ref : (tile_n, in_dim)        f32   (streamed per grid step)
    # w1_ref: (in_dim, hidden_pad)    bf16  (VMEM-resident)
    # b1_ref: (1, hidden_pad)         f32   (resident)
    # w2_ref: (hidden_pad, 128)       bf16  (output lanes zero-padded, resident)
    # b2_ref: (1, out_dim)            f32   (resident, compact)
    # o_ref : (tile_n, out_dim)       f32   (compact; masked vst on 2 lanes)
    x = x_ref[...].astype(jnp.bfloat16)                     # cast in-kernel (free)
    h = jnp.dot(x, w1_ref[...], preferred_element_type=jnp.float32)
    h = jnp.maximum(h + b1_ref[...], 0.0)                   # bias + ReLU in f32
    y = jnp.dot(h.astype(jnp.bfloat16), w2_ref[...],
                preferred_element_type=jnp.float32)
    out_dim = o_ref.shape[1]
    o_ref[...] = (y[:, :out_dim] + b2_ref[...]).astype(o_ref.dtype)


def node_label_predictor(x, w1, b1, w2, b2, *, max_tile_n=_MAX_TILE_N):
    """Forward pass of NodeLabelPredictor: relu(x @ w1 + b1) @ w2 + b2.

    x : [N, in_dim]  (any float dtype; cast to bf16 inside the kernel)
    w1: [in_dim, hidden]   (transposed vs. PyTorch's [out, in] layout)
    b1: [hidden]
    w2: [hidden, 2]
    b2: [2]
    Returns logits [N, 2] in float32.
    """
    n, in_dim = x.shape
    hidden = w1.shape[1]
    out_dim = w2.shape[1]

    # --- One-time weight prep (resident, tiny) -------------------------------
    hidden_pad = _round_up(hidden, _LANE)     # lane-dense h
    lane_pad = _LANE                          # full-lane second-matmul output

    w1_p = jnp.zeros((in_dim, hidden_pad), jnp.bfloat16)
    w1_p = w1_p.at[:, :hidden].set(w1.astype(jnp.bfloat16))
    b1_p = jnp.zeros((1, hidden_pad), jnp.float32)
    b1_p = b1_p.at[:, :hidden].set(jnp.asarray(b1, jnp.float32).reshape(1, hidden))
    w2_p = jnp.zeros((hidden_pad, lane_pad), jnp.bfloat16)
    w2_p = w2_p.at[:hidden, :out_dim].set(w2.astype(jnp.bfloat16))
    b2_c = jnp.asarray(b2, jnp.float32).reshape(1, out_dim)

    # --- Row tiling: large tiles (multiple of 16), uneven tail handled by the
    # grid's boundary block (OOB rows are masked on store, no jnp.pad copy). ---
    tile_n = min(_round_up(max_tile_n, 16), _round_up(n, 16))
    grid = (pl.cdiv(n, tile_n),)

    flops = 2 * n * (in_dim * hidden_pad + hidden_pad * lane_pad)
    bytes_accessed = (x.size * x.dtype.itemsize
                      + w1_p.size * 2 + b1_p.size * 4
                      + w2_p.size * 2 + b2_c.size * 4
                      + n * out_dim * 4)

    out = pl.pallas_call(
        _mlp_kernel,
        out_shape=jax.ShapeDtypeStruct((n, out_dim), jnp.float32),
        grid_spec=pltpu.PrefetchScalarGridSpec(
            num_scalar_prefetch=0,
            grid=grid,
            in_specs=[
                pl.BlockSpec((tile_n, in_dim), lambda i: (i, 0)),      # x tile
                pl.BlockSpec((in_dim, hidden_pad), lambda i: (0, 0)),  # w1 resident
                pl.BlockSpec((1, hidden_pad), lambda i: (0, 0)),       # b1 resident
                pl.BlockSpec((hidden_pad, lane_pad), lambda i: (0, 0)),# w2 resident
                pl.BlockSpec((1, out_dim), lambda i: (0, 0)),          # b2 resident
            ],
            out_specs=pl.BlockSpec((tile_n, out_dim), lambda i: (i, 0)),
        ),
        compiler_params=pltpu.CompilerParams(
            dimension_semantics=("parallel",),
            vmem_limit_bytes=32 * 1024 * 1024,
        ),
        cost_estimate=pl.CostEstimate(
            flops=flops, transcendentals=0, bytes_accessed=bytes_accessed),
    )(x, w1_p, b1_p, w2_p, b2_c)

    return out


def init_params(key, in_dim, hidden_dim, out_dim=2):
    # Deterministic synthetic init (uniform like PyTorch's default Linear init).
    k1, k2, k3, k4 = jax.random.split(key, 4)
    bound1 = 1.0 / (in_dim ** 0.5)
    bound2 = 1.0 / (hidden_dim ** 0.5)
    w1 = jax.random.uniform(k1, (in_dim, hidden_dim), jnp.float32, -bound1, bound1)
    b1 = jax.random.uniform(k2, (hidden_dim,), jnp.float32, -bound1, bound1)
    w2 = jax.random.uniform(k3, (hidden_dim, out_dim), jnp.float32, -bound2, bound2)
    b2 = jax.random.uniform(k4, (out_dim,), jnp.float32, -bound2, bound2)
    return w1, b1, w2, b2


if __name__ == "__main__":
    key = jax.random.PRNGKey(0)
    n, in_dim, hidden_dim = 20, 32, 64
    kx, kp = jax.random.split(key)
    x = jax.random.normal(kx, (n, in_dim), jnp.float32)
    w1, b1, w2, b2 = init_params(kp, in_dim, hidden_dim)

    # Plain-JAX reference (f32 throughout).
    ref = jnp.maximum(x @ w1 + b1[None, :], 0.0) @ w2 + b2[None, :]

    # Multi-tile path: tile of 16 rows -> grid of 2 with an uneven last block.
    out_tiled = node_label_predictor(x, w1, b1, w2, b2, max_tile_n=16)
    jax.block_until_ready(out_tiled)

    # Default (single-tile) path.
    out_full = node_label_predictor(x, w1, b1, w2, b2)
    jax.block_until_ready(out_full)

    assert out_tiled.shape == (n, 2) and out_full.shape == (n, 2)
    # bf16 MXU inputs with f32 accumulation -> slightly loosened tolerance.
    assert jnp.allclose(out_tiled, ref, atol=3e-2, rtol=3e-2)
    assert jnp.allclose(out_full, ref, atol=3e-2, rtol=3e-2)
    print("KERNEL_OK")
</pallas_src>

<mosaic_0001>
module attributes {stable_mosaic.version = 11 : i64} {
  func.func @_mlp_kernel(%arg0: i32, %arg1: memref<16x32xf32, #tpu.memory_space<vmem>>, %arg2: memref<32x128xbf16, #tpu.memory_space<vmem>>, %arg3: memref<1x128xf32, #tpu.memory_space<vmem>>, %arg4: memref<128x128xbf16, #tpu.memory_space<vmem>>, %arg5: memref<1x2xf32, #tpu.memory_space<vmem>>, %arg6: memref<16x2xf32, #tpu.memory_space<vmem>>) attributes {dimension_semantics = [#tpu.dimension_semantics<parallel>], iteration_bounds = array<i64: 2>, scalar_prefetch = 0 : i64, scratch_operands = 0 : i64, tpu.core_type = #tpu.core_type<tc>, window_params = [{transform_indices = @transform_0, window_bounds = array<i64: 16, 32>}, {pipeline_mode = #tpu.pipeline_mode<synchronous>, transform_indices = @transform_1, window_bounds = array<i64: 32, 128>}, {pipeline_mode = #tpu.pipeline_mode<synchronous>, transform_indices = @transform_2, window_bounds = array<i64: 1, 128>}, {pipeline_mode = #tpu.pipeline_mode<synchronous>, transform_indices = @transform_3, window_bounds = array<i64: 128, 128>}, {pipeline_mode = #tpu.pipeline_mode<synchronous>, transform_indices = @transform_4, window_bounds = array<i64: 1, 2>}, {transform_indices = @transform_5, window_bounds = array<i64: 16, 2>}]} {
    %c0 = arith.constant 0 : index
    %c0_0 = arith.constant 0 : index
    %0 = vector.load %arg1[%c0, %c0_0] : memref<16x32xf32, #tpu.memory_space<vmem>>, vector<16x32xf32>
    %1 = arith.truncf %0 : vector<16x32xf32> to vector<16x32xbf16>
    %c0_1 = arith.constant 0 : index
    %c0_2 = arith.constant 0 : index
    %2 = vector.load %arg2[%c0_1, %c0_2] : memref<32x128xbf16, #tpu.memory_space<vmem>>, vector<32x128xbf16>
    %cst = arith.constant dense<0.000000e+00> : vector<16x128xf32>
    %3 = tpu.matmul %1, %2, %cst {dimension_numbers = #tpu.dot_dimension_numbers<[1], [0], [0], [1], [0, 0, 1, 1], [], []>} : vector<16x32xbf16>, vector<32x128xbf16>, vector<16x128xf32> -> vector<16x128xf32>
    %c0_3 = arith.constant 0 : index
    %c0_4 = arith.constant 0 : index
    %4 = vector.load %arg3[%c0_3, %c0_4] : memref<1x128xf32, #tpu.memory_space<vmem>>, vector<1x128xf32>
    %5 = vector.broadcast %4 : vector<1x128xf32> to vector<16x128xf32>
    %6 = arith.addf %3, %5 : vector<16x128xf32>
    %cst_5 = arith.constant 0.000000e+00 : f32
    %7 = vector.broadcast %cst_5 : f32 to vector<16x128xf32>
    %8 = arith.maximumf %6, %7 : vector<16x128xf32>
    %9 = arith.truncf %8 : vector<16x128xf32> to vector<16x128xbf16>
    %c0_6 = arith.constant 0 : index
    %c0_7 = arith.constant 0 : index
    %10 = vector.load %arg4[%c0_6, %c0_7] : memref<128x128xbf16, #tpu.memory_space<vmem>>, vector<128x128xbf16>
    %cst_8 = arith.constant dense<0.000000e+00> : vector<16x128xf32>
    %11 = tpu.matmul %9, %10, %cst_8 {dimension_numbers = #tpu.dot_dimension_numbers<[1], [0], [0], [1], [0, 0, 1, 1], [], []>} : vector<16x128xbf16>, vector<128x128xbf16>, vector<16x128xf32> -> vector<16x128xf32>
    %12 = vector.extract_strided_slice %11 {offsets = [0, 0], sizes = [16, 2], strides = [1, 1]} : vector<16x128xf32> to vector<16x2xf32>
    %c0_9 = arith.constant 0 : index
    %c0_10 = arith.constant 0 : index
    %13 = vector.load %arg5[%c0_9, %c0_10] : memref<1x2xf32, #tpu.memory_space<vmem>>, vector<1x2xf32>
    %14 = vector.broadcast %13 : vector<1x2xf32> to vector<16x2xf32>
    %15 = arith.addf %12, %14 : vector<16x2xf32>
    %c0_11 = arith.constant 0 : index
    %c0_12 = arith.constant 0 : index
    %16 = vector.load %arg6[%c0_11, %c0_12] : memref<16x2xf32, #tpu.memory_space<vmem>>, vector<16x2xf32>
    tpu.vector_store %arg6[%c0_11, %c0_12], %15 {strides = array<i32>} : memref<16x2xf32, #tpu.memory_space<vmem>>, vector<16x2xf32>,
    return
  }
  func.func @transform_0(%arg0: i32) -> (i32, i32) {
    %c0_i32 = arith.constant 0 : i32
    %c0_i32_0 = arith.constant 0 : i32
    return %arg0, %c0_i32 : i32, i32
  }
  func.func @transform_1(%arg0: i32) -> (i32, i32) {
    %c0_i32 = arith.constant 0 : i32
    %c0_i32_0 = arith.constant 0 : i32
    %c0_i32_1 = arith.constant 0 : i32
    return %c0_i32, %c0_i32_0 : i32, i32
  }
  func.func @transform_2(%arg0: i32) -> (i32, i32) {
    %c0_i32 = arith.constant 0 : i32
    %c0_i32_0 = arith.constant 0 : i32
    %c0_i32_1 = arith.constant 0 : i32
    return %c0_i32, %c0_i32_0 : i32, i32
  }
  func.func @transform_3(%arg0: i32) -> (i32, i32) {
    %c0_i32 = arith.constant 0 : i32
    %c0_i32_0 = arith.constant 0 : i32
    %c0_i32_1 = arith.constant 0 : i32
    return %c0_i32, %c0_i32_0 : i32, i32
  }
  func.func @transform_4(%arg0: i32) -> (i32, i32) {
    %c0_i32 = arith.constant 0 : i32
    %c0_i32_0 = arith.constant 0 : i32
    %c0_i32_1 = arith.constant 0 : i32
    return %c0_i32, %c0_i32_0 : i32, i32
  }
  func.func @transform_5(%arg0: i32) -> (i32, i32) {
    %c0_i32 = arith.constant 0 : i32
    %c0_i32_0 = arith.constant 0 : i32
    return %arg0, %c0_i32 : i32, i32
  }
}

</mosaic_0001>

<bundles_post_ra>
// kernel: tpu_custom_call.1
= control target key start
LH: loop header
LB: loop body
LE: loop exit
PB: predicated region body
PF: predicated region fallthrough
CT: control target
= control target key end

     0   :  { %10 = vsyncpa [#allocation3], 0  ;;  %s1404_s0 = inlined_call_operand.hbm [shape: f32[20,32], index: 0, kind: input, shape index: {}]   ;;  %s1405_s1 = inlined_call_operand.hbm [shape: bf16[32,128], index: 1, kind: input, shape index: {}]   ;;  %s1406_s2 = inlined_call_operand.vmem [shape: f32[1,128], index: 2, kind: input, shape index: {}]   ;;  %s1407_s3 = inlined_call_operand.hbm [shape: bf16[128,128], index: 3, kind: input, shape index: {}]   ;;  %s1408_s4 = inlined_call_operand.vmem [shape: f32[1,2], index: 4, kind: input, shape index: {}]   ;;  %s1409_s5 = inlined_call_operand.vmem [shape: f32[20,2], index: 5, kind: output, shape index: {}]  }
   0x1   :  { %12 = vsyncpa [#allocation3 + $0x1], 0 }
   0x2   :  { %13 = vsyncpa [#allocation5], 0  ;;  %s1177_s18 = smov 0   ;;  %s1179_s19 = smov 0  }
   0x3   :  { %s1181_s20 = smov 0   ;;  %s1183_s21 = smov 0  }
   0x4 LB: > { %s1196_s22 = sadd.s32 4294967295, %s1104_s21   ;;  %s1199_s23 = sadd.s32 1, %s1104_s21   ;;  %s1104_s21 = sphi %s1183_s21, %s1427_s21   ;;  %s1100_s20 = sphi %s1181_s20, %s1426_s20   ;;  %s1096_s19 = sphi %s1179_s19, %s1425_s19   ;;  %s1092_s18 = sphi %s1177_s18, %s1424_s18  }
   0x5   : > { %s23_s24 = ssub.s32 %s1104_s21, %s1199_s23  ;;  %s26_s25 = sadd.s32 1, %s1100_s20 }
   0x6   : > { %p24_p0 = scmp.eq.s32.totalorder %s23_s24, 0  ;;  %p33_p1 = scmp.ne.s32.totalorder %s1100_s20, %s1096_s19 }
   0x7   : > { %p34_p2 = scmp.eq.s32.totalorder %s1104_s21, 0  ;;  %p39_p3 = scmp.ne.s32.totalorder %s1096_s19, %s1092_s18 }
   0x8   : > { %s1209_s26 = scalar_select %p24_p0, %s1100_s20, %s26_s25  }
   0x9   : > { %p1211_p4 = por %p34_p2, %p33_p1  ;;  %p1410_p5 = scmp.eq.s32.totalorder %s1196_s22, 0 }
   0xa   : > { %p147_p6 = scmp.eq.s32.totalorder %s1196_s22, 1  ;;  %p726_p7 = scmp.ge.s32.totalorder %s1104_s21, 1 }
   0xb   : > { %s1413_s27 = scalar_select %p1211_p4, 1, 0 }
   0xc   : > { %p1220_p8 = por %p1410_p5, %p39_p3  ;;  %p160_p9 = scmp.lt.s32.totalorder %s1104_s21, 3 }
   0xd   : > { %p1225_p10 = por %p147_p6, %p33_p1  ;;  %s1138_s6 = smov [#allocation4]  }
   0xe   : > { %s1414_s28 = scalar_select %p1220_p8, 1, 0 }
   0xf   : > { %s1415_s29 = scalar_select %p1225_p10, 1, 0 }
  0x10   : > { %p1229_p11 = pnand %p726_p7, %p160_p9  ;;  %s172_s7 = sshll.u32 %s1138_s6, 4  ;;  %s173_s7 = int_to_ptr.vmem [resolvable:$true] %s172_s7 }
  0x11   : > { %s1139_s9 = smov [#allocation6]   ;;  %s950_s13 = scalar_lea.hbm %s1405_s1, 256 }
  0x12   : > { %s1416_s30 = scalar_select %p1229_p11, 1, 0 }
  0x13   : > { %p825_p12 = pneg %p1229_p11  ;;  %s188_s10 = sshll.u32 %s1139_s9, 4  ;;  %s1241_s10 = int_to_ptr.vmem [resolvable:$true] %s188_s10 }
  0x14   : > { %p951_p0 = scmp.ne.s32.totalorder %s1405_s1, %s950_s13  ;;  %p957_p6 = scmp.lt.u32.totalorder %s950_s13, %s1405_s1 }
  0x15   : > { %p1237_p13 = pnand %p825_p12, %p1410_p5 }
  0x17   : > { %p952_p1 = pneg %p1237_p13 }
  0x19   : > { %p953_p2 = pnand %p952_p1, %p951_p0 }
  0x1b   : > { %p954_p3 = pneg %p953_p2 }
  0x1d   : > { %p959_p7 = pnand %p957_p6, %p954_p3 }
  0x1f   : > { %962 = shalt.err (!%p959_p7)
}
  0x20   : > { %s963_s18 = scalar_lea.vmem %s173_s7, 256  ;;  %p971_p10 = scmp.lt.s32.totalorder %s173_s7, %s173_s7 }
  0x21   : > { %p964_p9 = scmp.ne.s32.totalorder %s173_s7, %s963_s18  ;;  %p972_p8 = scmp.lt.s32.totalorder %s963_s18, %s963_s18 }
  0x23   : > { %p966_p12 = pnand %p964_p9, %p952_p1  ;;  %p973_p11 = por %p972_p8, %p971_p10 }
  0x25   : > { %p967_p5 = pneg %p966_p12 }
  0x27   : > { %p974_p4 = pnand %p973_p11, %p967_p5 }
  0x29   : > { %977 = shalt.err (!%p974_p4)
}
  0x2a   : > { %s1140_s24 = smov 64   ;;  %s1141_s25 = smov 4  }
  0x2b   : > { %828 = dma.hbm_to_vmem [thread:$0]  (!%p1237_p13), %s1405_s1, 256, %s173_s7, [#allocation5], %s1140_s24, %s1140_s24, %s1141_s25  }
  0x2c   : > { %s978_s13 = scalar_lea.hbm %s1407_s3, 1024 }
  0x2d   : > { %p979_p0 = scmp.ne.s32.totalorder %s1407_s3, %s978_s13  ;;  %p985_p8 = scmp.lt.u32.totalorder %s978_s13, %s1407_s3 }
  0x2f   : > { %p981_p4 = pnand %p979_p0, %p952_p1 }
  0x31   : > { %p982_p5 = pneg %p981_p4 }
  0x33   : > { %p987_p10 = pnand %p985_p8, %p982_p5 }
  0x35   : > { %990 = shalt.err (!%p987_p10)
}
  0x36   : > { %s991_s7 = scalar_lea.vmem %s1241_s10, 1024  ;;  %p999_p6 = scmp.lt.s32.totalorder %s1241_s10, %s1241_s10 }
  0x37   : > { %p992_p11 = scmp.ne.s32.totalorder %s1241_s10, %s991_s7  ;;  %p1000_p7 = scmp.lt.s32.totalorder %s991_s7, %s991_s7 }
  0x39   : > { %p994_p2 = pnand %p992_p11, %p952_p1  ;;  %p1001_p9 = por %p1000_p7, %p999_p6 }
  0x3b   : > { %p995_p3 = pneg %p994_p2 }
  0x3d   : > { %p1002_p12 = pnand %p1001_p9, %p995_p3 }
  0x3f   : > { %1005 = shalt.err (!%p1002_p12)
}
  0x40   : > { %831 = dma.hbm_to_vmem [thread:$0]  (!%p1237_p13), %s1407_s3, 1024, %s1241_s10, [#allocation5], %s1140_s24, %s1140_s24, %s1141_s25  }
  0x41   : > { %p729_p0 = scmp.ge.s32.totalorder %s1104_s21, 2 }
  0x42   : > { %p1418_p4 = scmp.ne.s32.totalorder (!%p729_p0), %s1413_s27, 0 }
  0x43   : > { %201 = sbr.rel (%p729_p0) target bundleno = 109 (0x6d), region = 32 }
  0x4a   : > { %204 = sbr.rel (!%p1418_p4) target bundleno = 109 (0x6d), region = 36  ;;  %s205_s9 = sand.u32 (%p1418_p4), 1, %s1100_s20  }
  0x4b   : > { %s731_s11 = sshll.u32 (%p1418_p4), %s1104_s21, 1  ;;  %s730_s12 = sshll.u32 (%p1418_p4), %s205_s9, 4 }
  0x4c   : > { %s211_s13 = ssub.s32 (%p1418_p4), 3, %s731_s11  ;;  %s1298_s15 = scalar_lea.sflag (%p1418_p4), [#allocation3], %s205_s9 }
  0x4d   : > { %p212_p1 = scmp.lt.s32.totalorder (%p1418_p4), %s211_s13, 2  ;;  %s209_s10 = scalar_lea.vmem (%p1418_p4), [#allocation2], %s730_s12 }
  0x51   : > { %s1429_s13 = smov (!%p212_p1, %s211_s13), 2 }
  0x52   : > { %s1295_s8 = sshll.u32 %s1429_s13, 7 }
  0x53   : > { %s216_s14 = ssub.s32 256, %s1295_s8 }
  0x54   : > { %217 = vsyncadd %s1298_s15, %s216_s14  ;;  %p733_p13 = scmp.ne.s32.totalorder %s1295_s8, 0  ;;  %s772_s27 = sshll.u32 %s1104_s21, 8 }
  0x55   : > { %s1306_s16 = scalar_lea.hbm %s1404_s0, %s772_s27  ;;  %s222_s17 = sshll.u32 %s209_s10, 4  ;;  %s1308_s17 = int_to_ptr.vmem [resolvable:$true] %s222_s17 }
  0x56   : > { %s1006_s7 = scalar_lea.hbm %s1306_s16, %s1295_s8  ;;  %s1010_s21 = scalar_lea.hbm %s1404_s0, 384 }
  0x57   : > { %p1007_p5 = scmp.ne.s32.totalorder %s1306_s16, %s1006_s7  ;;  %p1011_p11 = scmp.lt.u32.totalorder %s1306_s16, %s1404_s0 }
  0x58   : > { %p1012_p2 = scmp.lt.u32.totalorder %s1010_s21, %s1006_s7  ;;  %p1014_p6 = scmp.lt.u32.totalorder %s1006_s7, %s1306_s16 }
  0x59   : > { %p1008_p8 = pnand %p1007_p5, %p733_p13 }
  0x5a   : > { %p1013_p3 = por %p1012_p2, %p1011_p11 }
  0x5b   : > { %p1009_p10 = pneg %p1008_p8 }
  0x5c   : > { %p1015_p7 = por %p1014_p6, %p1013_p3 }
  0x5e   : > { %p1016_p9 = pnand %p1015_p7, %p1009_p10 }
  0x60   : > { %1019 = shalt.err (!%p1016_p9)
}
  0x61   : > { %s1020_s12 = scalar_lea.vmem %s1308_s17, %s1295_s8  ;;  %s1142_s13 = smov [#allocation2]  }
  0x62   : > { %p1021_p12 = scmp.ne.s32.totalorder %s1308_s17, %s1020_s12  ;;  %s1024_s14 = sshll.u32 %s1142_s13, 4  ;;  %s1025_s14 = int_to_ptr.vmem [resolvable:$false] %s1024_s14 }
  0x63   : > { %s1026_s10 = scalar_lea.vmem %s1025_s14, 512  ;;  %p1027_p1 = scmp.lt.s32.totalorder %s1308_s17, %s1025_s14 }
  0x64   : > { %p1022_p0 = pnand %p1021_p12, %p733_p13  ;;  %p1028_p5 = scmp.lt.s32.totalorder %s1026_s10, %s1020_s12 }
  0x66   : > { %p1023_p4 = pneg %p1022_p0  ;;  %p1029_p8 = por %p1028_p5, %p1027_p1 }
  0x68   : > { %p1030_p11 = pnand %p1029_p8, %p1023_p4 }
  0x6a   : > { %1033 = shalt.err (!%p1030_p11)
}
  0x6b   : > { %s1143_s27 = smov 128   ;;  %s1144_s24 = smov 8  }
  0x6c   : > { %228 = dma.hbm_to_vmem [thread:$0]  (%p733_p13), %s1306_s16, %s1295_s8, %s1308_s17, %s1298_s15, %s1143_s27, %s1143_s27, %s1144_s24  }
  0x6d PF: > { %p1419_p10 = scmp.ne.s32.totalorder %s1416_s30, 0 }
  0x6e   : > { %s236_s25 = sand.u32 (!%p1419_p10), 1, %s1096_s19   ;;  %p1420_p2 = scmp.ne.s32.totalorder (!%p1419_p10), %s1414_s28, 0 }
  0x6f   : > { %234 = sbr.rel (%p1419_p10) target bundleno = 618 (0x26a), region = 40  ;;  %s1338_s7 = sshll.u32 (!%p1419_p10), %s236_s25, 4 }
  0x70   : > { %s237_s18 = scalar_lea.sflag (!%p1419_p10), [#allocation3], %s236_s25  ;;  %s240_s6 = scalar_lea.vmem (!%p1419_p10), [#allocation2], %s1338_s7 }
  0x76   : > { %1083 = dma.done.wait (%p1420_p2), %s237_s18, 256  }
  0x77   : > { %1085 = vsyncadd (%p1420_p2), %s237_s18, 4294967040  ;;  %p1421_p13 = scmp.eq.s32.totalorder %s1196_s22, 0 }
  0x79   : > { %1087 = dma.done.wait (%p1421_p13), [#allocation5], 1280   ;;  %p1422_p3 = pmov %p1421_p13 }
  0x7a   : > { %v1145_v0 = vmov 0.0   ;;  %vm1146_vm0 = vmmov 0   ;;  %v940_v1 = vld [vmem:[#allocation4] sm:$0xff]   ;;  %v941_v2 = vld [vmem:[#allocation4 + $0x8] sm:$0xff]   ;;  %v942_v5 = vld [vmem:[#allocation6] sm:$0xff]   ;;  %vm311_vm1 = vcmask 261120  }
  0x7b   : > { %1089 = vsyncadd (%p1422_p3), [#allocation5], 4294966016  ;;  %788 = vmatprep.subr.bf16.mxu0 %v1145_v0  ;;  %792 = vmatprep.mubr.msk.bf16.mxu0 %vm1146_vm0, %v1145_v0  ;;  %v285_v3 = vld [vmem:[%s240_s6] sm:$0xff]  ;;  %v286_v4 = vld [vmem:[%s240_s6 + $0x8] sm:$0xff]  ;;  %vm473_vm2 = vcmask 15360   ;;  %s1356_s16 = scalar_lea.vmem [#allocation7], %s1338_s7  }
  0x7c   : > { %796 = vmatprep.subr.bf16.mxu1 %v1145_v0  ;;  %812 = vmatprep.mubr.msk.bf16.mxu1 %vm1146_vm0, %v1145_v0  ;;  %v287_v6 = vpack.c.bf16 %v286_v4, %v285_v3  ;;  %v943_v7 = vld [vmem:[#allocation6 + $0x8] sm:$0xff]   ;;  %v944_v8 = vld [vmem:[#allocation6 + $0x10] sm:$0xff]   ;;  %v945_v9 = vld [vmem:[#allocation6 + $0x18] sm:$0xff]   ;;  %p1423_p6 = scmp.ne.s32.totalorder %s1415_s29, 0 }
  0x7d   : > { %789 = vmatpush3.bf16.msra.mxu0 %v940_v1  ;;  %797 = vmatpush3.bf16.msra.mxu1 %v942_v5  ;;  %v946_v10 = vld [vmem:[#allocation6 + $0x20] sm:$0xff]   ;;  %v947_v11 = vld [vmem:[#allocation6 + $0x28] sm:$0xff]   ;;  %v948_v12 = vld [vmem:[#allocation6 + $0x30] sm:$0xff]   ;;  %s756_s17 = sshll.u32 (%p1423_p6), %s1196_s22, 1  ;;  %s773_s21 = sshll.u32 (%p1423_p6), %s1196_s22, 4 }
  0x7e   : > { %790 = vmatprep.subr.bf16.mxu0 %v1145_v0  ;;  %798 = vmatprep.subr.bf16.mxu1 %v1145_v0  ;;  %v949_v13 = vld [vmem:[#allocation6 + $0x38] sm:$0xff]   ;;  %v742_v14 = vld [vmem:[%s1406_s2] ss:$0 sm:$0xff]  ;;  %s484_s9 = ssub.s32 (%p1423_p6), 3, %s756_s17  ;;  %s1367_s13 = scalar_lea.vmem (%p1423_p6), %s1409_s5, %s773_s21  }
  0x7f   : > { %v754_v24 = vld [vmem:[%s1408_s4] ss:$0 sm:$0xff]  ;;  %p485_p7 = scmp.lt.s32.totalorder (%p1423_p6), %s484_s9, 2 }
  0x81   : > { %791 = vmatpush3.bf16.msra.mxu0 %v941_v2  ;;  %799 = vmatpush3.bf16.msra.mxu1 %v943_v7 }
  0x82   : > { %800 = vmatprep.subr.bf16.mxu1 %v1145_v0 }
  0x84   : > { %793 = vmatmul.mubr.msk.bf16.vlgmr.msra.gmra.mrb[0].mxu0 %vm311_vm1, %v287_v6 }
  0x85   : > { %801 = vmatpush3.bf16.msra.mxu1 %v944_v8 }
  0x86   : > { %802 = vmatprep.subr.bf16.mxu1 %v1145_v0 }
  0x89   : > { %803 = vmatpush3.bf16.msra.mxu1 %v945_v9 }
  0x8a   : > { %804 = vmatprep.subr.bf16.mxu1 %v1145_v0 }
  0x8d   : > { %805 = vmatpush3.bf16.msra.mxu1 %v946_v10 }
  0x8e   : > { %806 = vmatprep.subr.bf16.mxu1 %v1145_v0 }
  0x91   : > { %807 = vmatpush3.bf16.msra.mxu1 %v947_v11 }
  0x92   : > { %808 = vmatprep.subr.bf16.mxu1 %v1145_v0 }
  0x95   : > { %809 = vmatpush3.bf16.msra.mxu1 %v948_v12 }
  0x96   : > { %810 = vmatprep.subr.bf16.mxu1 %v1145_v0 }
  0x99   : > { %811 = vmatpush3.bf16.msra.mxu1 %v949_v13 }
 0x157   : > { %v349_v15 = vpop.f32.mrb[0].mxu0 }
 0x158   : > { %v350_v16 = vadd.f32 %v742_v14, %v349_v15  ;;  %v794_v17 = vpop.f32.mrb[1].mxu0 }
 0x159   : > { %v352_v18 = vpop.f32.mrb[2].mxu0 }
 0x15a   : > { %v353_v19 = vadd.f32 %v742_v14, %v352_v18  ;;  %v795_v20 = vpop.f32.mrb[3].mxu0  ;;  %v356_v21 = vmax.f32 %v350_v16, 0.0 }
 0x15c   : > { %v357_v22 = vmax.f32 %v353_v19, 0.0 }
 0x15e   : > { %v358_v23 = vpack.c.bf16 %v357_v22, %v356_v21 }
 0x160   : > { %813 = vmatmul.mubr.bf16.vlgmr.msra.gmra.mrb[0].mxu1 %v358_v23 }
 0x232   : > { %482 = sbr.rel (!%p1423_p6) target bundleno = 618 (0x26a), region = 56 }
 0x233   : > { %v457_v25 = vpop.f32.mrb[0].mxu1 }
 0x234   : > { %v471_v26 = vadd.f32 %v754_v24, %v457_v25  ;;  %v814_v27 = vpop.f32.mrb[1].mxu1 }
 0x235   : > { %v460_v28 = vpop.f32.mrb[2].mxu1 }
 0x236   : > { %474 = vst.msk [vmem:[%s1356_s16] sm:$0xff] %vm473_vm2, %v471_v26  ;;  %v472_v29 = vadd.f32 %v754_v24, %v460_v28  ;;  %v815_v30 = vpop.f32.mrb[3].mxu1 }
 0x238   : > { %475 = vst.msk [vmem:[%s1356_s16 + $0x8] sm:$0xff] %vm473_vm2, %v472_v29 }
 0x239   : > { %s1431_s9 = smov (!%p485_p7, %s484_s9), 2 }
 0x23a   : > { %s757_s14 = sshll.u32 %s1431_s9, 7 }
 0x23b   : > { %p760_p9 = scmp.eq.s32.totalorder %s757_s14, 0 }
 0x23c   : > { %s1373_s29 = sshrl.u32 (!%p760_p9), %s1431_s9, 1 }
 0x23d   : > { %493 = sbr.rel (%p760_p9) target bundleno = 618 (0x26a), region = 60  ;;  %p761_p12 = scmp.le.s32.totalorder (!%p760_p9), %s1373_s29, 0 }
 0x244   : > { %660 = sbr.rel (%p761_p12) target bundleno = 597 (0x255), region = 142  ;;  %s1106_s22 = smov (!%p761_p12), %s1367_s13  }
 0x245   : > { %s1110_s10 = smov (!%p761_p12), %s1356_s16   ;;  %s1114_s27 = smov (!%p761_p12), 0  }
 0x246   : > { %s1118_s24 = smov (!%p761_p12), 0  }
 0x24b LB: >> { %v557_v31 = vld [vmem:[%s1112_s10] sm:$0xff]  ;;  %v559_v32 = vld [vmem:[%s1112_s10 + $0x8] sm:$0xff]  ;;  %s561_s25 = sadd.s32 1, %s1116_s27  ;;  %s551_s24 = sadd.s32 1, %s1120_s24   ;;  %s1120_s24 = sphi %s1118_s24, %s551_s24   ;;  %s1116_s27 = sphi %s1114_s27, %s1115_s27   ;;  %s1112_s10 = sphi %s1110_s10, %s566_s10   ;;  %s1108_s22 = sphi %s1106_s22, %s567_s22  }
 0x24c   : >> { %558 = vst [vmem:[%s1108_s22] sm:$0xff] %v557_v31  ;;  %560 = vst [vmem:[%s1108_s22 + $0x8] sm:$0xff] %v559_v32  ;;  %p562_p0 = scmp.ge.s32.totalorder %s561_s25, %s1373_s29  ;;  %p550_p4 = scmp.ge.s32.totalorder %s551_s24, %s1373_s29 }
 0x24e   : >> { %s1433_s25 = smov (%p562_p0, %s561_s25), 0  ;;  %553 = sbr.rel (!%p550_p4) target bundleno = 587 (0x24b), region = 148 }
 0x24f   : >> { %s762_s7 = sshll.u32 %s1433_s25, 4  ;;  %s1115_s27 = smov %s1433_s25  }
 0x250   : >> { %s566_s10 = scalar_lea.vmem %s1356_s16, %s762_s7 [#allocation7]   ;;  %s567_s22 = scalar_lea.vmem %s1367_s13, %s762_s7  }
 0x255 PF: > { %s1383_s18 = sand.u32 1, %s1431_s9   ;;  %s774_s6 = sshll.u32 %s1373_s29, 4 }
 0x256   : > { %s572_s28 = scalar_lea.vmem %s1356_s16, %s774_s6 [#allocation7]   ;;  %s574_s30 = scalar_lea.vmem %s1367_s13, %s774_s6  }
 0x257   : > { %p767_p1 = scmp.le.s32.totalorder %s1383_s18, 0 }
 0x258   : > { %s1122_s8 = smov (!%p767_p1), %s574_s30   ;;  %s1126_s15 = smov (!%p767_p1), %s572_s28  }
 0x259   : > { %674 = sbr.rel (%p767_p1) target bundleno = 618 (0x26a), region = 153  ;;  %s1130_s17 = smov (!%p767_p1), 0  }
 0x25a   : > { %s1134_s21 = smov (!%p767_p1), 0  }
 0x260 LB: >> { %v584_v33 = vld [vmem:[%s1128_s15] sm:$0xff]  ;;  %s586_s9 = sadd.s32 1, %s1132_s17  ;;  %s578_s21 = sadd.s32 1, %s1136_s21   ;;  %s1136_s21 = sphi %s1134_s21, %s578_s21   ;;  %s1132_s17 = sphi %s1130_s17, %s1131_s17   ;;  %s1128_s15 = sphi %s1126_s15, %s591_s15   ;;  %s1124_s8 = sphi %s1122_s8, %s592_s8  }
 0x261   : >> { %585 = vst [vmem:[%s1124_s8] sm:$0xff] %v584_v33  ;;  %p587_p5 = scmp.ge.s32.totalorder %s586_s9, %s1383_s18  ;;  %p577_p8 = scmp.ge.s32.totalorder %s578_s21, %s1383_s18 }
 0x263   : >> { %s1435_s9 = smov (%p587_p5, %s586_s9), 0  ;;  %580 = sbr.rel (!%p577_p8) target bundleno = 608 (0x260), region = 159 }
 0x264   : >> { %s768_s16 = sshll.u32 %s1435_s9, 3  ;;  %s1131_s17 = smov %s1435_s9  }
 0x265   : >> { %s591_s15 = scalar_lea.vmem %s572_s28, %s768_s16 [#allocation7]   ;;  %s592_s8 = scalar_lea.vmem %s574_s30, %s768_s16  }
 0x26a PF: > { %p16_p11 = scmp.ge.s32.totalorder %s1199_s23, 4   ;;  %s1424_s18 = smov %s1096_s19 }
 0x26b   : > { %s1425_s19 = smov %s1100_s20  ;;  %s1426_s20 = smov %s1209_s26 }
 0x26c   : > { %s1427_s21 = smov %s1199_s23  ;;  %18 = sbr.rel (!%p16_p11) target bundleno = 4 (0x4), region = 170 }
 0x273   :  { %608 = vsyncpa [#allocation3], 1 }
 0x274   :  { %610 = vsyncpa [#allocation3 + $0x1], 1 }
 0x275   :  { %611 = vsyncpa [#allocation5], 1 }

</bundles_post_ra>
